<compile_context>
chip_gen: v7x
topology: tpu7x:2x2x1
jax: 0.10.0
libtpu: 0.0.40
codegen_flags: <defaults>
</compile_context>

<pallas_src>
import functools

import jax
import jax.numpy as jnp
from jax import lax
from jax.experimental import pallas as pl
from jax.experimental.pallas import tpu as pltpu


def _round_up(x, m):
    return (x + m - 1) // m * m


# ----------------------------- Pallas kernel ------------------------------ #
def _matmul_bias_relu_kernel(p_ref, w_ref, b_ref, o_ref):
    """out = relu(p @ w + b).

    p_ref: (TILE_M, K_pad)  bf16 activation patches tile
    w_ref: (K_pad, Co_pad)  bf16 weights with BN scale folded in (resident)
    b_ref: (1, Co_pad)      f32 folded BN bias (resident)
    o_ref: (TILE_M, Co_pad) f32 output tile
    """
    acc = jnp.dot(p_ref[...], w_ref[...], preferred_element_type=jnp.float32)
    o_ref[...] = jnp.maximum(acc + b_ref[...], 0.0).astype(o_ref.dtype)


def _matmul_bias_relu(patches, w_mat, bias, tile_m):
    """Tiled (M_pad,K_pad)x(K_pad,Co_pad) matmul + bias + ReLU via Pallas."""
    m_pad, k_pad = patches.shape
    co_pad = w_mat.shape[1]
    grid = (m_pad // tile_m,)

    cost = pl.CostEstimate(
        flops=2 * m_pad * k_pad * co_pad,
        transcendentals=0,
        bytes_accessed=(m_pad * k_pad * 2      # bf16 patches
                        + k_pad * co_pad * 2   # bf16 weights
                        + co_pad * 4           # f32 bias
                        + m_pad * co_pad * 4), # f32 output
    )

    return pl.pallas_call(
        _matmul_bias_relu_kernel,
        out_shape=jax.ShapeDtypeStruct((m_pad, co_pad), jnp.float32),
        grid_spec=pltpu.PrefetchScalarGridSpec(
            num_scalar_prefetch=0,
            grid=grid,
            in_specs=[
                pl.BlockSpec((tile_m, k_pad), lambda i: (i, 0)),   # M-tiled
                pl.BlockSpec((k_pad, co_pad), lambda i: (0, 0)),   # resident
                pl.BlockSpec((1, co_pad), lambda i: (0, 0)),       # resident
            ],
            out_specs=pl.BlockSpec((tile_m, co_pad), lambda i: (i, 0)),
        ),
        compiler_params=pltpu.CompilerParams(
            dimension_semantics=("parallel",),      # megacore / v7x 2 TCs
            vmem_limit_bytes=32 * 1024 * 1024,      # safe on v7x's 64 MiB VMEM
        ),
        cost_estimate=cost,
    )(patches, w_mat, bias)


# ------------------------------- glue (JAX) -------------------------------- #
_TILE_M_MAX = 512  # ~85% of HBM roofline per measured tiling data; v7x-safe


def _choose_tile_m(m):
    return min(_TILE_M_MAX, _round_up(m, 8))


def _im2col(x_nhwc, kh, kw, stride, pad):
    """Extract conv patches. Returns (N*Ho*Wo, kh*kw*Cin), Ho, Wo."""
    N, H, W, C = x_nhwc.shape
    xp = jnp.pad(x_nhwc, ((0, 0), (pad, pad), (pad, pad), (0, 0)))
    Ho = (H + 2 * pad - kh) // stride + 1
    Wo = (W + 2 * pad - kw) // stride + 1
    cols = []
    for i in range(kh):
        for j in range(kw):
            cols.append(
                xp[:, i:i + Ho * stride:stride, j:j + Wo * stride:stride, :]
            )
    # (N, Ho, Wo, kh*kw, C) -> flatten so ordering matches HWIO weight reshape
    p = jnp.stack(cols, axis=3)
    return p.reshape(N * Ho * Wo, kh * kw * C), Ho, Wo


def conv_module_forward(x_nhwc, w_hwio, gamma, beta, mean, var, stride, pad,
                        eps=1e-5):
    """One ConvModule: conv(no bias) + BN(folded) + ReLU, via the Pallas kernel."""
    kh, kw, cin, cout = w_hwio.shape
    N = x_nhwc.shape[0]

    if kh == 1 and kw == 1 and stride == 1 and pad == 0:
        # 1x1 conv: no im2col, just a flat (N*H*W, Cin) matmul.
        _, Ho, Wo, _ = x_nhwc.shape
        patches = x_nhwc.reshape(N * Ho * Wo, cin)
    else:
        # TODO(synk): fuse im2col into the kernel (kh*kw shifted matmuls over an
        # NHWC input tile) to remove the kh*kw HBM inflation at real resolutions.
        patches, Ho, Wo = _im2col(x_nhwc, kh, kw, stride, pad)

    M, K = patches.shape

    # Fold BN into the conv:  bn(conv(x)) = conv(x, w*scale) + bias
    scale = gamma / jnp.sqrt(var + eps)               # (cout,)
    bias = beta - mean * scale                        # (cout,)
    w_mat = w_hwio.reshape(K, cout) * scale[None, :]  # scale folded into weights

    # Pad to MXU/lane-friendly shapes: K, Co -> multiples of 128; M -> tile_m.
    tile_m = _choose_tile_m(M)
    m_pad = _round_up(M, tile_m)
    k_pad = _round_up(K, 128)
    co_pad = _round_up(cout, 128)

    patches_p = jnp.pad(patches.astype(jnp.bfloat16),
                        ((0, m_pad - M), (0, k_pad - K)))
    w_p = jnp.pad(w_mat.astype(jnp.bfloat16),
                  ((0, k_pad - K), (0, co_pad - cout)))
    bias_p = jnp.pad(bias.astype(jnp.float32),
                     ((0, co_pad - cout),)).reshape(1, co_pad)

    out = _matmul_bias_relu(patches_p, w_p, bias_p, tile_m)
    return out[:M, :cout].reshape(N, Ho, Wo, cout)


# --------------------------- SpatialPath module ---------------------------- #
def make_spatial_path_params(key, in_channels, out_channels, mid_channels=64,
                             num_downscales=3):
    """Deterministic synthetic parameters (same shapes as the PyTorch module)."""
    layers = []
    ic = in_channels
    for i in range(num_downscales):
        ksize = 7 if i == 0 else 3
        if i != 0:
            ic = mid_channels
        layers.append(dict(ksize=ksize, stride=2, pad=ksize // 2,
                           cin=ic, cout=mid_channels))
    layers.append(dict(ksize=1, stride=1, pad=0,
                       cin=mid_channels, cout=out_channels))

    params = []
    for cfg in layers:
        key, kw_, kg, kb = jax.random.split(key, 4)
        kh = kw = cfg["ksize"]
        w = jax.random.normal(kw_, (kh, kw, cfg["cin"], cfg["cout"]),
                              jnp.float32) * 0.1
        gamma = 1.0 + 0.1 * jax.random.normal(kg, (cfg["cout"],), jnp.float32)
        beta = 0.1 * jax.random.normal(kb, (cfg["cout"],), jnp.float32)
        mean = jnp.zeros((cfg["cout"],), jnp.float32)   # BN running stats
        var = jnp.ones((cfg["cout"],), jnp.float32)
        params.append(dict(w=w, gamma=gamma, beta=beta, mean=mean, var=var,
                           stride=cfg["stride"], pad=cfg["pad"]))
    return params


def spatial_path_forward(x_nchw, params):
    """Forward pass matching SpatialPath.forward (input/output NCHW)."""
    x = jnp.transpose(x_nchw, (0, 2, 3, 1))  # NCHW -> NHWC
    for p in params:
        x = conv_module_forward(x, p["w"], p["gamma"], p["beta"], p["mean"],
                                p["var"], p["stride"], p["pad"])
    return jnp.transpose(x, (0, 3, 1, 2))    # NHWC -> NCHW


# ------------------------------ reference ---------------------------------- #
def _reference_forward(x_nchw, params, eps=1e-5, quantize=False):
    """lax.conv reference. quantize=True mimics the kernel's bf16 matmul inputs."""
    x = jnp.transpose(x_nchw, (0, 2, 3, 1))
    for p in params:
        scale = p["gamma"] / jnp.sqrt(p["var"] + eps)
        bias = p["beta"] - p["mean"] * scale
        if quantize:
            w = (p["w"] * scale[None, None, None, :]).astype(jnp.bfloat16)
            y = lax.conv_general_dilated(
                x.astype(jnp.bfloat16), w,
                window_strides=(p["stride"], p["stride"]),
                padding=[(p["pad"], p["pad"]), (p["pad"], p["pad"])],
                dimension_numbers=("NHWC", "HWIO", "NHWC"),
                preferred_element_type=jnp.float32) + bias
        else:
            y = lax.conv_general_dilated(
                x, p["w"],
                window_strides=(p["stride"], p["stride"]),
                padding=[(p["pad"], p["pad"]), (p["pad"], p["pad"])],
                dimension_numbers=("NHWC", "HWIO", "NHWC")) * scale + bias
        x = jnp.maximum(y, 0.0)
    return jnp.transpose(x, (0, 3, 1, 2))


if __name__ == "__main__":
    # Small shapes consistent with the module (NCHW like PyTorch).
    batch, in_channels, H, W = 2, 4, 16, 16
    mid_channels, out_channels = 16, 32

    key = jax.random.PRNGKey(0)
    kx, kp = jax.random.split(key)
    x = jax.random.normal(kx, (batch, in_channels, H, W), jnp.float32)

    params = make_spatial_path_params(kp, in_channels, out_channels,
                                      mid_channels=mid_channels,
                                      num_downscales=3)

    fwd = jax.jit(functools.partial(spatial_path_forward, params=params))
    out = jax.block_until_ready(fwd(x))

    # Sanity: 3 stride-2 downscales -> H/8 x W/8, out_channels channels.
    assert out.shape == (batch, out_channels, H // 8, W // 8), out.shape

    # Tight correctness check vs a reference using the same bf16 matmul inputs
    # (validates im2col ordering, BN folding, bias/ReLU epilogue exactly).
    ref_q = jax.block_until_ready(_reference_forward(x, params, quantize=True))
    assert jnp.allclose(out, ref_q, atol=2e-3, rtol=2e-3), \
        float(jnp.max(jnp.abs(out - ref_q)))

    # Loose sanity vs the full-f32 module semantics (bounds bf16 quant error).
    ref = jax.block_until_ready(_reference_forward(x, params, quantize=False))
    err = float(jnp.max(jnp.abs(out - ref)))
    ref_scale = max(1.0, float(jnp.max(jnp.abs(ref))))
    assert err <= 1e-1 * ref_scale, (err, ref_scale)

    print("KERNEL_OK")
</pallas_src>

<mosaic_0001>
module attributes {stable_mosaic.version = 11 : i64} {
  func.func @_matmul_bias_relu_kernel(%arg0: i32, %arg1: memref<128x256xbf16, #tpu.memory_space<vmem>>, %arg2: memref<256x128xbf16, #tpu.memory_space<vmem>>, %arg3: memref<1x128xf32, #tpu.memory_space<vmem>>, %arg4: memref<128x128xf32, #tpu.memory_space<vmem>>) attributes {dimension_semantics = [#tpu.dimension_semantics<parallel>], iteration_bounds = array<i64: 1>, scalar_prefetch = 0 : i64, scratch_operands = 0 : i64, tpu.core_type = #tpu.core_type<tc>, window_params = [{transform_indices = @transform_0, window_bounds = array<i64: 128, 256>}, {pipeline_mode = #tpu.pipeline_mode<synchronous>, transform_indices = @transform_1, window_bounds = array<i64: 256, 128>}, {pipeline_mode = #tpu.pipeline_mode<synchronous>, transform_indices = @transform_2, window_bounds = array<i64: 1, 128>}, {transform_indices = @transform_3, window_bounds = array<i64: 128, 128>}]} {
    %c0 = arith.constant 0 : index
    %c0_0 = arith.constant 0 : index
    %0 = vector.load %arg1[%c0, %c0_0] : memref<128x256xbf16, #tpu.memory_space<vmem>>, vector<128x256xbf16>
    %c0_1 = arith.constant 0 : index
    %c0_2 = arith.constant 0 : index
    %1 = vector.load %arg2[%c0_1, %c0_2] : memref<256x128xbf16, #tpu.memory_space<vmem>>, vector<256x128xbf16>
    %cst = arith.constant dense<0.000000e+00> : vector<128x128xf32>
    %2 = tpu.matmul %0, %1, %cst {dimension_numbers = #tpu.dot_dimension_numbers<[1], [0], [0], [1], [0, 0, 1, 1], [], []>} : vector<128x256xbf16>, vector<256x128xbf16>, vector<128x128xf32> -> vector<128x128xf32>
    %c0_3 = arith.constant 0 : index
    %c0_4 = arith.constant 0 : index
    %3 = vector.load %arg3[%c0_3, %c0_4] : memref<1x128xf32, #tpu.memory_space<vmem>>, vector<1x128xf32>
    %4 = vector.broadcast %3 : vector<1x128xf32> to vector<128x128xf32>
    %5 = arith.addf %2, %4 : vector<128x128xf32>
    %cst_5 = arith.constant 0.000000e+00 : f32
    %6 = vector.broadcast %cst_5 : f32 to vector<128x128xf32>
    %7 = arith.maximumf %5, %6 : vector<128x128xf32>
    %c0_6 = arith.constant 0 : index
    %c0_7 = arith.constant 0 : index
    %8 = vector.load %arg4[%c0_6, %c0_7] : memref<128x128xf32, #tpu.memory_space<vmem>>, vector<128x128xf32>
    tpu.vector_store %arg4[%c0_6, %c0_7], %7 {strides = array<i32>} : memref<128x128xf32, #tpu.memory_space<vmem>>, vector<128x128xf32>,
    return
  }
  func.func @transform_0(%arg0: i32) -> (i32, i32) {
    %c0_i32 = arith.constant 0 : i32
    %c0_i32_0 = arith.constant 0 : i32
    return %arg0, %c0_i32 : i32, i32
  }
  func.func @transform_1(%arg0: i32) -> (i32, i32) {
    %c0_i32 = arith.constant 0 : i32
    %c0_i32_0 = arith.constant 0 : i32
    %c0_i32_1 = arith.constant 0 : i32
    return %c0_i32, %c0_i32_0 : i32, i32
  }
  func.func @transform_2(%arg0: i32) -> (i32, i32) {
    %c0_i32 = arith.constant 0 : i32
    %c0_i32_0 = arith.constant 0 : i32
    %c0_i32_1 = arith.constant 0 : i32
    return %c0_i32, %c0_i32_0 : i32, i32
  }
  func.func @transform_3(%arg0: i32) -> (i32, i32) {
    %c0_i32 = arith.constant 0 : i32
    %c0_i32_0 = arith.constant 0 : i32
    return %arg0, %c0_i32 : i32, i32
  }
}

module attributes {stable_mosaic.version = 11 : i64} {
  func.func @_matmul_bias_relu_kernel(%arg0: i32, %arg1: memref<32x256xbf16, #tpu.memory_space<vmem>>, %arg2: memref<256x128xbf16, #tpu.memory_space<vmem>>, %arg3: memref<1x128xf32, #tpu.memory_space<vmem>>, %arg4: memref<32x128xf32, #tpu.memory_space<vmem>>) attributes {dimension_semantics = [#tpu.dimension_semantics<parallel>], iteration_bounds = array<i64: 1>, scalar_prefetch = 0 : i64, scratch_operands = 0 : i64, tpu.core_type = #tpu.core_type<tc>, window_params = [{transform_indices = @transform_0, window_bounds = array<i64: 32, 256>}, {pipeline_mode = #tpu.pipeline_mode<synchronous>, transform_indices = @transform_1, window_bounds = array<i64: 256, 128>}, {pipeline_mode = #tpu.pipeline_mode<synchronous>, transform_indices = @transform_2, window_bounds = array<i64: 1, 128>}, {transform_indices = @transform_3, window_bounds = array<i64: 32, 128>}]} {
    %c0 = arith.constant 0 : index
    %c0_0 = arith.constant 0 : index
    %0 = vector.load %arg1[%c0, %c0_0] : memref<32x256xbf16, #tpu.memory_space<vmem>>, vector<32x256xbf16>
    %c0_1 = arith.constant 0 : index
    %c0_2 = arith.constant 0 : index
    %1 = vector.load %arg2[%c0_1, %c0_2] : memref<256x128xbf16, #tpu.memory_space<vmem>>, vector<256x128xbf16>
    %cst = arith.constant dense<0.000000e+00> : vector<32x128xf32>
    %2 = tpu.matmul %0, %1, %cst {dimension_numbers = #tpu.dot_dimension_numbers<[1], [0], [0], [1], [0, 0, 1, 1], [], []>} : vector<32x256xbf16>, vector<256x128xbf16>, vector<32x128xf32> -> vector<32x128xf32>
    %c0_3 = arith.constant 0 : index
    %c0_4 = arith.constant 0 : index
    %3 = vector.load %arg3[%c0_3, %c0_4] : memref<1x128xf32, #tpu.memory_space<vmem>>, vector<1x128xf32>
    %4 = vector.broadcast %3 : vector<1x128xf32> to vector<32x128xf32>
    %5 = arith.addf %2, %4 : vector<32x128xf32>
    %cst_5 = arith.constant 0.000000e+00 : f32
    %6 = vector.broadcast %cst_5 : f32 to vector<32x128xf32>
    %7 = arith.maximumf %5, %6 : vector<32x128xf32>
    %c0_6 = arith.constant 0 : index
    %c0_7 = arith.constant 0 : index
    %8 = vector.load %arg4[%c0_6, %c0_7] : memref<32x128xf32, #tpu.memory_space<vmem>>, vector<32x128xf32>
    tpu.vector_store %arg4[%c0_6, %c0_7], %7 {strides = array<i32>} : memref<32x128xf32, #tpu.memory_space<vmem>>, vector<32x128xf32>,
    return
  }
  func.func @transform_0(%arg0: i32) -> (i32, i32) {
    %c0_i32 = arith.constant 0 : i32
    %c0_i32_0 = arith.constant 0 : i32
    return %arg0, %c0_i32 : i32, i32
  }
  func.func @transform_1(%arg0: i32) -> (i32, i32) {
    %c0_i32 = arith.constant 0 : i32
    %c0_i32_0 = arith.constant 0 : i32
    %c0_i32_1 = arith.constant 0 : i32
    return %c0_i32, %c0_i32_0 : i32, i32
  }
  func.func @transform_2(%arg0: i32) -> (i32, i32) {
    %c0_i32 = arith.constant 0 : i32
    %c0_i32_0 = arith.constant 0 : i32
    %c0_i32_1 = arith.constant 0 : i32
    return %c0_i32, %c0_i32_0 : i32, i32
  }
  func.func @transform_3(%arg0: i32) -> (i32, i32) {
    %c0_i32 = arith.constant 0 : i32
    %c0_i32_0 = arith.constant 0 : i32
    return %arg0, %c0_i32 : i32, i32
  }
}

module attributes {stable_mosaic.version = 11 : i64} {
  func.func @_matmul_bias_relu_kernel(%arg0: i32, %arg1: memref<8x256xbf16, #tpu.memory_space<vmem>>, %arg2: memref<256x128xbf16, #tpu.memory_space<vmem>>, %arg3: memref<1x128xf32, #tpu.memory_space<vmem>>, %arg4: memref<8x128xf32, #tpu.memory_space<vmem>>) attributes {dimension_semantics = [#tpu.dimension_semantics<parallel>], iteration_bounds = array<i64: 1>, scalar_prefetch = 0 : i64, scratch_operands = 0 : i64, tpu.core_type = #tpu.core_type<tc>, window_params = [{transform_indices = @transform_0, window_bounds = array<i64: 8, 256>}, {pipeline_mode = #tpu.pipeline_mode<synchronous>, transform_indices = @transform_1, window_bounds = array<i64: 256, 128>}, {pipeline_mode = #tpu.pipeline_mode<synchronous>, transform_indices = @transform_2, window_bounds = array<i64: 1, 128>}, {transform_indices = @transform_3, window_bounds = array<i64: 8, 128>}]} {
    %c0 = arith.constant 0 : index
    %c0_0 = arith.constant 0 : index
    %0 = vector.load %arg1[%c0, %c0_0] : memref<8x256xbf16, #tpu.memory_space<vmem>>, vector<8x256xbf16>
    %c0_1 = arith.constant 0 : index
    %c0_2 = arith.constant 0 : index
    %1 = vector.load %arg2[%c0_1, %c0_2] : memref<256x128xbf16, #tpu.memory_space<vmem>>, vector<256x128xbf16>
    %cst = arith.constant dense<0.000000e+00> : vector<8x128xf32>
    %2 = tpu.matmul %0, %1, %cst {dimension_numbers = #tpu.dot_dimension_numbers<[1], [0], [0], [1], [0, 0, 1, 1], [], []>} : vector<8x256xbf16>, vector<256x128xbf16>, vector<8x128xf32> -> vector<8x128xf32>
    %c0_3 = arith.constant 0 : index
    %c0_4 = arith.constant 0 : index
    %3 = vector.load %arg3[%c0_3, %c0_4] : memref<1x128xf32, #tpu.memory_space<vmem>>, vector<1x128xf32>
    %4 = vector.broadcast %3 : vector<1x128xf32> to vector<8x128xf32>
    %5 = arith.addf %2, %4 : vector<8x128xf32>
    %cst_5 = arith.constant 0.000000e+00 : f32
    %6 = vector.broadcast %cst_5 : f32 to vector<8x128xf32>
    %7 = arith.maximumf %5, %6 : vector<8x128xf32>
    %c0_6 = arith.constant 0 : index
    %c0_7 = arith.constant 0 : index
    %8 = vector.load %arg4[%c0_6, %c0_7] : memref<8x128xf32, #tpu.memory_space<vmem>>, vector<8x128xf32>
    tpu.vector_store %arg4[%c0_6, %c0_7], %7 {strides = array<i32>} : memref<8x128xf32, #tpu.memory_space<vmem>>, vector<8x128xf32>,
    return
  }
  func.func @transform_0(%arg0: i32) -> (i32, i32) {
    %c0_i32 = arith.constant 0 : i32
    %c0_i32_0 = arith.constant 0 : i32
    return %arg0, %c0_i32 : i32, i32
  }
  func.func @transform_1(%arg0: i32) -> (i32, i32) {
    %c0_i32 = arith.constant 0 : i32
    %c0_i32_0 = arith.constant 0 : i32
    %c0_i32_1 = arith.constant 0 : i32
    return %c0_i32, %c0_i32_0 : i32, i32
  }
  func.func @transform_2(%arg0: i32) -> (i32, i32) {
    %c0_i32 = arith.constant 0 : i32
    %c0_i32_0 = arith.constant 0 : i32
    %c0_i32_1 = arith.constant 0 : i32
    return %c0_i32, %c0_i32_0 : i32, i32
  }
  func.func @transform_3(%arg0: i32) -> (i32, i32) {
    %c0_i32 = arith.constant 0 : i32
    %c0_i32_0 = arith.constant 0 : i32
    return %arg0, %c0_i32 : i32, i32
  }
}

module attributes {stable_mosaic.version = 11 : i64} {
  func.func @_matmul_bias_relu_kernel(%arg0: i32, %arg1: memref<8x128xbf16, #tpu.memory_space<vmem>>, %arg2: memref<128x128xbf16, #tpu.memory_space<vmem>>, %arg3: memref<1x128xf32, #tpu.memory_space<vmem>>, %arg4: memref<8x128xf32, #tpu.memory_space<vmem>>) attributes {dimension_semantics = [#tpu.dimension_semantics<parallel>], iteration_bounds = array<i64: 1>, scalar_prefetch = 0 : i64, scratch_operands = 0 : i64, tpu.core_type = #tpu.core_type<tc>, window_params = [{transform_indices = @transform_0, window_bounds = array<i64: 8, 128>}, {pipeline_mode = #tpu.pipeline_mode<synchronous>, transform_indices = @transform_1, window_bounds = array<i64: 128, 128>}, {pipeline_mode = #tpu.pipeline_mode<synchronous>, transform_indices = @transform_2, window_bounds = array<i64: 1, 128>}, {transform_indices = @transform_3, window_bounds = array<i64: 8, 128>}]} {
    %c0 = arith.constant 0 : index
    %c0_0 = arith.constant 0 : index
    %0 = vector.load %arg1[%c0, %c0_0] : memref<8x128xbf16, #tpu.memory_space<vmem>>, vector<8x128xbf16>
    %c0_1 = arith.constant 0 : index
    %c0_2 = arith.constant 0 : index
    %1 = vector.load %arg2[%c0_1, %c0_2] : memref<128x128xbf16, #tpu.memory_space<vmem>>, vector<128x128xbf16>
    %cst = arith.constant dense<0.000000e+00> : vector<8x128xf32>
    %2 = tpu.matmul %0, %1, %cst {dimension_numbers = #tpu.dot_dimension_numbers<[1], [0], [0], [1], [0, 0, 1, 1], [], []>} : vector<8x128xbf16>, vector<128x128xbf16>, vector<8x128xf32> -> vector<8x128xf32>
    %c0_3 = arith.constant 0 : index
    %c0_4 = arith.constant 0 : index
    %3 = vector.load %arg3[%c0_3, %c0_4] : memref<1x128xf32, #tpu.memory_space<vmem>>, vector<1x128xf32>
    %4 = vector.broadcast %3 : vector<1x128xf32> to vector<8x128xf32>
    %5 = arith.addf %2, %4 : vector<8x128xf32>
    %cst_5 = arith.constant 0.000000e+00 : f32
    %6 = vector.broadcast %cst_5 : f32 to vector<8x128xf32>
    %7 = arith.maximumf %5, %6 : vector<8x128xf32>
    %c0_6 = arith.constant 0 : index
    %c0_7 = arith.constant 0 : index
    %8 = vector.load %arg4[%c0_6, %c0_7] : memref<8x128xf32, #tpu.memory_space<vmem>>, vector<8x128xf32>
    tpu.vector_store %arg4[%c0_6, %c0_7], %7 {strides = array<i32>} : memref<8x128xf32, #tpu.memory_space<vmem>>, vector<8x128xf32>,
    return
  }
  func.func @transform_0(%arg0: i32) -> (i32, i32) {
    %c0_i32 = arith.constant 0 : i32
    %c0_i32_0 = arith.constant 0 : i32
    return %arg0, %c0_i32 : i32, i32
  }
  func.func @transform_1(%arg0: i32) -> (i32, i32) {
    %c0_i32 = arith.constant 0 : i32
    %c0_i32_0 = arith.constant 0 : i32
    %c0_i32_1 = arith.constant 0 : i32
    return %c0_i32, %c0_i32_0 : i32, i32
  }
  func.func @transform_2(%arg0: i32) -> (i32, i32) {
    %c0_i32 = arith.constant 0 : i32
    %c0_i32_0 = arith.constant 0 : i32
    %c0_i32_1 = arith.constant 0 : i32
    return %c0_i32, %c0_i32_0 : i32, i32
  }
  func.func @transform_3(%arg0: i32) -> (i32, i32) {
    %c0_i32 = arith.constant 0 : i32
    %c0_i32_0 = arith.constant 0 : i32
    return %arg0, %c0_i32 : i32, i32
  }
}

</mosaic_0001>

<bundles_post_ra>
// kernel: spatial_path_forward.4
= control target key start
LH: loop header
LB: loop body
LE: loop exit
PB: predicated region body
PF: predicated region fallthrough
CT: control target
= control target key end

     0   :  { %s717_s1 = inlined_call_operand.vmem [shape: bf16[256,128], index: 1, kind: input, shape index: {}]   ;;  %s718_s0 = inlined_call_operand.vmem [shape: bf16[128,256], index: 0, kind: input, shape index: {}]   ;;  %s719_s2 = inlined_call_operand.vmem [shape: f32[1,128], index: 2, kind: input, shape index: {}]   ;;  %s720_s3 = inlined_call_operand.vmem [shape: f32[128,128], index: 3, kind: output, shape index: {}]  }
   0x1   :  { %v492_v0 = vld [vmem:[%s717_s1 + $0x40] sm:$0xff]   ;;  %v494_v2 = vld [vmem:[%s717_s1 + $0x48] sm:$0xff]   ;;  %v496_v4 = vld [vmem:[%s717_s1 + $0x50] sm:$0xff]  }
   0x2   :  { %v493_v1 = vld [vmem:[%s717_s1] sm:$0xff]   ;;  %412 = vmatprep.subr.bf16.mxu0 %v492_v0  ;;  %476 = vmatprep.subr.bf16.mxu1 %v492_v0  ;;  %v495_v3 = vld [vmem:[%s717_s1 + $0x8] sm:$0xff]   ;;  %v497_v5 = vld [vmem:[%s717_s1 + $0x10] sm:$0xff]  }
   0x3   :  { %413 = vmatpush3.bf16.msra.mxu0 %v493_v1  ;;  %484 = vmatpush3.bf16.msra.mxu1 %v493_v1  ;;  %v498_v6 = vld [vmem:[%s717_s1 + $0x58] sm:$0xff]   ;;  %v500_v8 = vld [vmem:[%s717_s1 + $0x60] sm:$0xff]   ;;  %v502_v10 = vld [vmem:[%s717_s1 + $0x68] sm:$0xff]  }
   0x4   :  { %414 = vmatprep.subr.bf16.mxu0 %v494_v2  ;;  %477 = vmatprep.subr.bf16.mxu1 %v494_v2  ;;  %v499_v7 = vld [vmem:[%s717_s1 + $0x18] sm:$0xff]   ;;  %v501_v9 = vld [vmem:[%s717_s1 + $0x20] sm:$0xff]   ;;  %v503_v13 = vld [vmem:[%s717_s1 + $0x28] sm:$0xff]  }
   0x5   :  { %v510_v11 = vld [vmem:[%s718_s0 + $0x4] ss:$8 sps:$4 sm:$0xff]   ;;  %v504_v14 = vld [vmem:[%s717_s1 + $0x70] sm:$0xff]   ;;  %v506_v16 = vld [vmem:[%s717_s1 + $0x78] sm:$0xff]  }
   0x6   :  { %v513_v12 = vld [vmem:[%s718_s0 + $0x44] ss:$8 sps:$4 sm:$0xff]   ;;  %278 = vmatprep.mubr.bf16.mxu0 %v510_v11  ;;  %v505_v15 = vld [vmem:[%s717_s1 + $0x30] sm:$0xff]   ;;  %v507_v17 = vld [vmem:[%s717_s1 + $0x38] sm:$0xff]  }
   0x7   :  { %415 = vmatpush3.bf16.msra.mxu0 %v495_v3  ;;  %485 = vmatpush3.bf16.msra.mxu1 %v495_v3  ;;  %v508_v18 = vld [vmem:[%s718_s0] ss:$8 sps:$4 sm:$0xff]   ;;  %v514_v20 = vld [vmem:[%s718_s0 + $0x14] ss:$8 sps:$4 sm:$0xff]   ;;  %v518_v22 = vld [vmem:[%s718_s0 + $0x10] ss:$8 sps:$4 sm:$0xff]  }
   0x8   :  { %416 = vmatprep.subr.bf16.mxu0 %v496_v4  ;;  %478 = vmatprep.subr.bf16.mxu1 %v496_v4  ;;  %v511_v19 = vld [vmem:[%s718_s0 + $0x40] ss:$8 sps:$4 sm:$0xff]   ;;  %v516_v21 = vld [vmem:[%s718_s0 + $0x54] ss:$8 sps:$4 sm:$0xff]   ;;  %v519_v23 = vld [vmem:[%s718_s0 + $0x50] ss:$8 sps:$4 sm:$0xff]  }
   0x9   :  { %310 = vmatprep.mubr.bf16.mxu1 %v513_v12  ;;  %v520_v24 = vld [vmem:[%s718_s0 + $0x24] ss:$8 sps:$4 sm:$0xff]   ;;  %v524_v26 = vld [vmem:[%s718_s0 + $0x20] ss:$8 sps:$4 sm:$0xff]   ;;  %v526_v28 = vld [vmem:[%s718_s0 + $0x34] ss:$8 sps:$4 sm:$0xff]  }
   0xa   :  { %v522_v25 = vld [vmem:[%s718_s0 + $0x64] ss:$8 sps:$4 sm:$0xff]   ;;  %v525_v27 = vld [vmem:[%s718_s0 + $0x60] ss:$8 sps:$4 sm:$0xff]   ;;  %v528_v29 = vld [vmem:[%s718_s0 + $0x74] ss:$8 sps:$4 sm:$0xff]  }
   0xb   :  { %417 = vmatpush3.bf16.msra.mxu0 %v497_v5  ;;  %486 = vmatpush3.bf16.msra.mxu1 %v497_v5  ;;  %v530_v30 = vld [vmem:[%s718_s0 + $0x30] ss:$8 sps:$4 sm:$0xff]   ;;  %v651_v34 = vld [vmem:[%s719_s2] ss:$0 sm:$0xff] }
   0xc   :  { %418 = vmatprep.subr.bf16.mxu0 %v498_v6  ;;  %479 = vmatprep.subr.bf16.mxu1 %v498_v6  ;;  %v531_v31 = vld [vmem:[%s718_s0 + $0x70] ss:$8 sps:$4 sm:$0xff]  }
   0xf   :  { %419 = vmatpush3.bf16.msra.mxu0 %v499_v7  ;;  %487 = vmatpush3.bf16.msra.mxu1 %v499_v7 }
  0x10   :  { %420 = vmatprep.subr.bf16.mxu0 %v500_v8  ;;  %480 = vmatprep.subr.bf16.mxu1 %v500_v8 }
  0x13   :  { %421 = vmatpush3.bf16.msra.mxu0 %v501_v9  ;;  %488 = vmatpush3.bf16.msra.mxu1 %v501_v9 }
  0x14   :  { %422 = vmatprep.subr.bf16.mxu0 %v502_v10  ;;  %481 = vmatprep.subr.bf16.mxu1 %v502_v10 }
  0x17   :  { %423 = vmatpush3.bf16.msra.mxu0 %v503_v13  ;;  %489 = vmatpush3.bf16.msra.mxu1 %v503_v13 }
  0x18   :  { %424 = vmatprep.subr.bf16.mxu0 %v504_v14  ;;  %482 = vmatprep.subr.bf16.mxu1 %v504_v14 }
  0x1b   :  { %425 = vmatpush3.bf16.msra.mxu0 %v505_v15  ;;  %490 = vmatpush3.bf16.msra.mxu1 %v505_v15 }
  0x1c   :  { %426 = vmatprep.subr.bf16.mxu0 %v506_v16  ;;  %483 = vmatprep.subr.bf16.mxu1 %v506_v16 }
  0x1f   :  { %427 = vmatpush3.bf16.msra.mxu0 %v507_v17  ;;  %491 = vmatpush3.bf16.msra.mxu1 %v507_v17 }
  0x22   :  { %279 = vmatmul.mubr.bf16.vlgmr.msra.gmra.mrb[0].mxu0 %v508_v18  ;;  %311 = vmatmul.mubr.bf16.vlgmr.msra.gmra.mrb[0].mxu1 %v511_v19 }
  0x23   :  { %286 = vmatprep.mubr.bf16.mxu0 %v514_v20  ;;  %318 = vmatprep.mubr.bf16.mxu1 %v516_v21 }
  0x2a   :  { %287 = vmatmul.mubr.bf16.gmra.mrb[4].mxu0 %v518_v22  ;;  %319 = vmatmul.mubr.bf16.gmra.mrb[4].mxu1 %v519_v23 }
  0x2b   :  { %294 = vmatprep.mubr.bf16.mxu0 %v520_v24  ;;  %326 = vmatprep.mubr.bf16.mxu1 %v522_v25 }
  0x32   :  { %295 = vmatmul.mubr.bf16.gmra.mrb[8].mxu0 %v524_v26  ;;  %327 = vmatmul.mubr.bf16.gmra.mrb[8].mxu1 %v525_v27 }
  0x33   :  { %302 = vmatprep.mubr.bf16.mxu0 %v526_v28  ;;  %334 = vmatprep.mubr.bf16.mxu1 %v528_v29 }
  0x3a   :  { %303 = vmatmul.mubr.bf16.gmra.mrb[12].mxu0 %v530_v30  ;;  %335 = vmatmul.mubr.bf16.gmra.mrb[12].mxu1 %v531_v31 }
  0xf5   :  { %v428_v32 = vpop.f32.mrb[0].mxu0  ;;  %v452_v33 = vpop.f32.mrb[0].mxu1 }
  0xf6   :  { %v429_v35 = vpop.f32.mrb[1].mxu0  ;;  %v453_v36 = vpop.f32.mrb[1].mxu1 }
  0xf7   :  { %v430_v37 = vadd.f32 %v429_v35, %v428_v32  ;;  %v454_v38 = vadd.f32 %v453_v36, %v452_v33  ;;  %v431_v39 = vpop.f32.mrb[2].mxu0  ;;  %v455_v40 = vpop.f32.mrb[2].mxu1 }
  0xf8   :  { %v432_v41 = vpop.f32.mrb[3].mxu0  ;;  %v456_v42 = vpop.f32.mrb[3].mxu1 }
  0xf9   :  { %v281_v43 = vadd.f32 %v430_v37, %v651_v34  ;;  %v313_v44 = vadd.f32 %v454_v38, %v651_v34  ;;  %v433_v45 = vadd.f32 %v432_v41, %v431_v39  ;;  %v457_v46 = vadd.f32 %v456_v42, %v455_v40 }
  0xfb   :  { %v343_v47 = vmax.f32 %v281_v43, 0.0  ;;  %v351_v48 = vmax.f32 %v313_v44, 0.0  ;;  %v284_v49 = vadd.f32 %v433_v45, %v651_v34  ;;  %v316_v50 = vadd.f32 %v457_v46, %v651_v34 }
  0xfd   :  { %359 = vst [vmem:[%s720_s3] sm:$0xff] %v343_v47  ;;  %367 = vst [vmem:[%s720_s3 + $0x40] sm:$0xff] %v351_v48  ;;  %v344_v51 = vmax.f32 %v284_v49, 0.0  ;;  %v352_v52 = vmax.f32 %v316_v50, 0.0  ;;  %v434_v53 = vpop.f32.mrb[4].mxu0  ;;  %v458_v54 = vpop.f32.mrb[4].mxu1 }
  0xfe   :  { %v435_v55 = vpop.f32.mrb[5].mxu0  ;;  %v459_v56 = vpop.f32.mrb[5].mxu1 }
  0xff   :  { %360 = vst [vmem:[%s720_s3 + $0x8] sm:$0xff] %v344_v51  ;;  %368 = vst [vmem:[%s720_s3 + $0x48] sm:$0xff] %v352_v52  ;;  %v436_v57 = vadd.f32 %v435_v55, %v434_v53  ;;  %v460_v58 = vadd.f32 %v459_v56, %v458_v54  ;;  %v437_v59 = vpop.f32.mrb[6].mxu0  ;;  %v461_v60 = vpop.f32.mrb[6].mxu1 }
 0x100   :  { %v438_v61 = vpop.f32.mrb[7].mxu0  ;;  %v462_v62 = vpop.f32.mrb[7].mxu1 }
 0x101   :  { %v289_v63 = vadd.f32 %v436_v57, %v651_v34  ;;  %v321_v0 = vadd.f32 %v460_v58, %v651_v34  ;;  %v439_v1 = vadd.f32 %v438_v61, %v437_v59  ;;  %v463_v2 = vadd.f32 %v462_v62, %v461_v60 }
 0x103   :  { %v345_v3 = vmax.f32 %v289_v63, 0.0  ;;  %v353_v4 = vmax.f32 %v321_v0, 0.0  ;;  %v292_v5 = vadd.f32 %v439_v1, %v651_v34  ;;  %v324_v6 = vadd.f32 %v463_v2, %v651_v34 }
 0x105   :  { %361 = vst [vmem:[%s720_s3 + $0x10] sm:$0xff] %v345_v3  ;;  %369 = vst [vmem:[%s720_s3 + $0x50] sm:$0xff] %v353_v4  ;;  %v346_v7 = vmax.f32 %v292_v5, 0.0  ;;  %v354_v8 = vmax.f32 %v324_v6, 0.0  ;;  %v440_v9 = vpop.f32.mrb[8].mxu0  ;;  %v464_v10 = vpop.f32.mrb[8].mxu1 }
 0x106   :  { %v441_v11 = vpop.f32.mrb[9].mxu0  ;;  %v465_v12 = vpop.f32.mrb[9].mxu1 }
 0x107   :  { %362 = vst [vmem:[%s720_s3 + $0x18] sm:$0xff] %v346_v7  ;;  %370 = vst [vmem:[%s720_s3 + $0x58] sm:$0xff] %v354_v8  ;;  %v442_v13 = vadd.f32 %v441_v11, %v440_v9  ;;  %v466_v14 = vadd.f32 %v465_v12, %v464_v10  ;;  %v443_v15 = vpop.f32.mrb[10].mxu0  ;;  %v467_v16 = vpop.f32.mrb[10].mxu1 }
 0x108   :  { %v444_v17 = vpop.f32.mrb[11].mxu0  ;;  %v468_v18 = vpop.f32.mrb[11].mxu1 }
 0x109   :  { %v297_v19 = vadd.f32 %v442_v13, %v651_v34  ;;  %v329_v20 = vadd.f32 %v466_v14, %v651_v34  ;;  %v445_v21 = vadd.f32 %v444_v17, %v443_v15  ;;  %v469_v22 = vadd.f32 %v468_v18, %v467_v16 }
 0x10b   :  { %v347_v23 = vmax.f32 %v297_v19, 0.0  ;;  %v355_v24 = vmax.f32 %v329_v20, 0.0  ;;  %v300_v25 = vadd.f32 %v445_v21, %v651_v34  ;;  %v332_v26 = vadd.f32 %v469_v22, %v651_v34 }
 0x10d   :  { %363 = vst [vmem:[%s720_s3 + $0x20] sm:$0xff] %v347_v23  ;;  %371 = vst [vmem:[%s720_s3 + $0x60] sm:$0xff] %v355_v24  ;;  %v348_v27 = vmax.f32 %v300_v25, 0.0  ;;  %v356_v28 = vmax.f32 %v332_v26, 0.0  ;;  %v446_v29 = vpop.f32.mrb[12].mxu0  ;;  %v470_v30 = vpop.f32.mrb[12].mxu1 }
 0x10e   :  { %v447_v31 = vpop.f32.mrb[13].mxu0  ;;  %v471_v32 = vpop.f32.mrb[13].mxu1 }
 0x10f   :  { %364 = vst [vmem:[%s720_s3 + $0x28] sm:$0xff] %v348_v27  ;;  %372 = vst [vmem:[%s720_s3 + $0x68] sm:$0xff] %v356_v28  ;;  %v448_v33 = vadd.f32 %v447_v31, %v446_v29  ;;  %v472_v35 = vadd.f32 %v471_v32, %v470_v30  ;;  %v449_v36 = vpop.f32.mrb[14].mxu0  ;;  %v473_v37 = vpop.f32.mrb[14].mxu1 }
 0x110   :  { %v450_v38 = vpop.f32.mrb[15].mxu0  ;;  %v474_v39 = vpop.f32.mrb[15].mxu1 }
 0x111   :  { %v305_v40 = vadd.f32 %v448_v33, %v651_v34  ;;  %v337_v41 = vadd.f32 %v472_v35, %v651_v34  ;;  %v451_v42 = vadd.f32 %v450_v38, %v449_v36  ;;  %v475_v43 = vadd.f32 %v474_v39, %v473_v37 }
 0x113   :  { %v349_v44 = vmax.f32 %v305_v40, 0.0  ;;  %v357_v45 = vmax.f32 %v337_v41, 0.0  ;;  %v308_v46 = vadd.f32 %v451_v42, %v651_v34  ;;  %v340_v47 = vadd.f32 %v475_v43, %v651_v34 }
 0x115   :  { %365 = vst [vmem:[%s720_s3 + $0x30] sm:$0xff] %v349_v44  ;;  %373 = vst [vmem:[%s720_s3 + $0x70] sm:$0xff] %v357_v45  ;;  %v350_v48 = vmax.f32 %v308_v46, 0.0  ;;  %v358_v49 = vmax.f32 %v340_v47, 0.0 }
 0x117   :  { %366 = vst [vmem:[%s720_s3 + $0x38] sm:$0xff] %v350_v48  ;;  %374 = vst [vmem:[%s720_s3 + $0x78] sm:$0xff] %v358_v49 }

// kernel: spatial_path_forward.5
= control target key start
LH: loop header
LB: loop body
LE: loop exit
PB: predicated region body
PF: predicated region fallthrough
CT: control target
= control target key end

     0   :  { %s417_s1 = inlined_call_operand.vmem [shape: bf16[256,128], index: 1, kind: input, shape index: {}]   ;;  %s418_s0 = inlined_call_operand.vmem [shape: bf16[32,256], index: 0, kind: input, shape index: {}]   ;;  %s419_s2 = inlined_call_operand.vmem [shape: f32[1,128], index: 2, kind: input, shape index: {}]   ;;  %s420_s3 = inlined_call_operand.vmem [shape: f32[32,128], index: 3, kind: output, shape index: {}]  }
   0x1   :  { %v300_v0 = vld [vmem:[%s417_s1 + $0x40] sm:$0xff]   ;;  %v302_v2 = vld [vmem:[%s417_s1 + $0x48] sm:$0xff]   ;;  %v304_v4 = vld [vmem:[%s417_s1 + $0x50] sm:$0xff]  }
   0x2   :  { %v301_v1 = vld [vmem:[%s417_s1] sm:$0xff]   ;;  %256 = vmatprep.subr.bf16.mxu0 %v300_v0  ;;  %284 = vmatprep.subr.bf16.mxu1 %v300_v0  ;;  %v303_v3 = vld [vmem:[%s417_s1 + $0x8] sm:$0xff]   ;;  %v305_v5 = vld [vmem:[%s417_s1 + $0x10] sm:$0xff]  }
   0x3   :  { %257 = vmatpush3.bf16.msra.mxu0 %v301_v1  ;;  %292 = vmatpush3.bf16.msra.mxu1 %v301_v1  ;;  %v306_v6 = vld [vmem:[%s417_s1 + $0x58] sm:$0xff]   ;;  %v308_v8 = vld [vmem:[%s417_s1 + $0x60] sm:$0xff]   ;;  %v310_v10 = vld [vmem:[%s417_s1 + $0x68] sm:$0xff]  }
   0x4   :  { %258 = vmatprep.subr.bf16.mxu0 %v302_v2  ;;  %285 = vmatprep.subr.bf16.mxu1 %v302_v2  ;;  %v307_v7 = vld [vmem:[%s417_s1 + $0x18] sm:$0xff]   ;;  %v309_v9 = vld [vmem:[%s417_s1 + $0x20] sm:$0xff]   ;;  %v311_v13 = vld [vmem:[%s417_s1 + $0x28] sm:$0xff]  }
   0x5   :  { %v318_v11 = vld [vmem:[%s418_s0 + $0x4] ss:$8 sps:$4 sm:$0xff]   ;;  %v321_v12 = vld [vmem:[%s418_s0 + $0x14] ss:$8 sps:$4 sm:$0xff]   ;;  %v316_v18 = vld [vmem:[%s418_s0] ss:$8 sps:$4 sm:$0xff]  }
   0x6   :  { %v312_v14 = vld [vmem:[%s417_s1 + $0x70] sm:$0xff]   ;;  %206 = vmatprep.mubr.bf16.mxu0 %v318_v11  ;;  %214 = vmatprep.mubr.bf16.mxu1 %v321_v12  ;;  %v314_v16 = vld [vmem:[%s417_s1 + $0x78] sm:$0xff]   ;;  %v235_v22 = vld [vmem:[%s419_s2] ss:$0 sm:$0xff] }
   0x7   :  { %259 = vmatpush3.bf16.msra.mxu0 %v303_v3  ;;  %293 = vmatpush3.bf16.msra.mxu1 %v303_v3  ;;  %v313_v15 = vld [vmem:[%s417_s1 + $0x30] sm:$0xff]   ;;  %v315_v17 = vld [vmem:[%s417_s1 + $0x38] sm:$0xff]  }
   0x8   :  { %260 = vmatprep.subr.bf16.mxu0 %v304_v4  ;;  %286 = vmatprep.subr.bf16.mxu1 %v304_v4  ;;  %v319_v19 = vld [vmem:[%s418_s0 + $0x10] ss:$8 sps:$4 sm:$0xff]  }
   0xb   :  { %261 = vmatpush3.bf16.msra.mxu0 %v305_v5  ;;  %294 = vmatpush3.bf16.msra.mxu1 %v305_v5 }
   0xc   :  { %262 = vmatprep.subr.bf16.mxu0 %v306_v6  ;;  %287 = vmatprep.subr.bf16.mxu1 %v306_v6 }
   0xf   :  { %263 = vmatpush3.bf16.msra.mxu0 %v307_v7  ;;  %295 = vmatpush3.bf16.msra.mxu1 %v307_v7 }
  0x10   :  { %264 = vmatprep.subr.bf16.mxu0 %v308_v8  ;;  %288 = vmatprep.subr.bf16.mxu1 %v308_v8 }
  0x13   :  { %265 = vmatpush3.bf16.msra.mxu0 %v309_v9  ;;  %296 = vmatpush3.bf16.msra.mxu1 %v309_v9 }
  0x14   :  { %266 = vmatprep.subr.bf16.mxu0 %v310_v10  ;;  %289 = vmatprep.subr.bf16.mxu1 %v310_v10 }
  0x17   :  { %267 = vmatpush3.bf16.msra.mxu0 %v311_v13  ;;  %297 = vmatpush3.bf16.msra.mxu1 %v311_v13 }
  0x18   :  { %268 = vmatprep.subr.bf16.mxu0 %v312_v14  ;;  %290 = vmatprep.subr.bf16.mxu1 %v312_v14 }
  0x1b   :  { %269 = vmatpush3.bf16.msra.mxu0 %v313_v15  ;;  %298 = vmatpush3.bf16.msra.mxu1 %v313_v15 }
  0x1c   :  { %270 = vmatprep.subr.bf16.mxu0 %v314_v16  ;;  %291 = vmatprep.subr.bf16.mxu1 %v314_v16 }
  0x1f   :  { %271 = vmatpush3.bf16.msra.mxu0 %v315_v17  ;;  %299 = vmatpush3.bf16.msra.mxu1 %v315_v17 }
  0x22   :  { %207 = vmatmul.mubr.bf16.vlgmr.msra.gmra.mrb[0].mxu0 %v316_v18  ;;  %215 = vmatmul.mubr.bf16.vlgmr.msra.gmra.mrb[0].mxu1 %v319_v19 }
  0xf5   :  { %v272_v20 = vpop.f32.mrb[0].mxu0  ;;  %v278_v21 = vpop.f32.mrb[0].mxu1 }
  0xf6   :  { %v273_v23 = vpop.f32.mrb[1].mxu0  ;;  %v279_v24 = vpop.f32.mrb[1].mxu1 }
  0xf7   :  { %v274_v25 = vadd.f32 %v273_v23, %v272_v20  ;;  %v280_v26 = vadd.f32 %v279_v24, %v278_v21  ;;  %v275_v27 = vpop.f32.mrb[2].mxu0  ;;  %v281_v28 = vpop.f32.mrb[2].mxu1 }
  0xf8   :  { %v276_v29 = vpop.f32.mrb[3].mxu0  ;;  %v282_v30 = vpop.f32.mrb[3].mxu1 }
  0xf9   :  { %v209_v31 = vadd.f32 %v274_v25, %v235_v22  ;;  %v217_v32 = vadd.f32 %v280_v26, %v235_v22  ;;  %v277_v33 = vadd.f32 %v276_v29, %v275_v27  ;;  %v283_v34 = vadd.f32 %v282_v30, %v281_v28 }
  0xfb   :  { %v223_v35 = vmax.f32 %v209_v31, 0.0  ;;  %v225_v36 = vmax.f32 %v217_v32, 0.0  ;;  %v212_v37 = vadd.f32 %v277_v33, %v235_v22  ;;  %v220_v38 = vadd.f32 %v283_v34, %v235_v22 }
  0xfd   :  { %227 = vst [vmem:[%s420_s3] sm:$0xff] %v223_v35  ;;  %229 = vst [vmem:[%s420_s3 + $0x10] sm:$0xff] %v225_v36  ;;  %v224_v39 = vmax.f32 %v212_v37, 0.0  ;;  %v226_v40 = vmax.f32 %v220_v38, 0.0 }
  0xff   :  { %228 = vst [vmem:[%s420_s3 + $0x8] sm:$0xff] %v224_v39  ;;  %230 = vst [vmem:[%s420_s3 + $0x18] sm:$0xff] %v226_v40 }

// kernel: spatial_path_forward.6
= control target key start
LH: loop header
LB: loop body
LE: loop exit
PB: predicated region body
PF: predicated region fallthrough
CT: control target
= control target key end

     0   :  { %s340_s1 = inlined_call_operand.vmem [shape: bf16[256,128], index: 1, kind: input, shape index: {}]   ;;  %s341_s0 = inlined_call_operand.vmem [shape: bf16[8,256], index: 0, kind: input, shape index: {}]   ;;  %s342_s2 = inlined_call_operand.vmem [shape: f32[1,128], index: 2, kind: input, shape index: {}]   ;;  %s343_s3 = inlined_call_operand.vmem [shape: f32[8,128], index: 3, kind: output, shape index: {}]  }
   0x1   :  { %v245_v0 = vld [vmem:[%s340_s1 + $0x40] sm:$0xff]   ;;  %v247_v2 = vld [vmem:[%s340_s1 + $0x48] sm:$0xff]   ;;  %v249_v4 = vld [vmem:[%s340_s1 + $0x50] sm:$0xff]  }
   0x2   :  { %v246_v1 = vld [vmem:[%s340_s1] sm:$0xff]   ;;  %223 = vmatprep.subr.bf16.mxu0 %v245_v0  ;;  %v248_v3 = vld [vmem:[%s340_s1 + $0x8] sm:$0xff]   ;;  %v250_v5 = vld [vmem:[%s340_s1 + $0x10] sm:$0xff]  }
   0x3   :  { %224 = vmatpush3.bf16.msra.mxu0 %v246_v1  ;;  %v251_v6 = vld [vmem:[%s340_s1 + $0x58] sm:$0xff]   ;;  %v253_v8 = vld [vmem:[%s340_s1 + $0x60] sm:$0xff]   ;;  %v255_v10 = vld [vmem:[%s340_s1 + $0x68] sm:$0xff]  }
   0x4   :  { %225 = vmatprep.subr.bf16.mxu0 %v247_v2  ;;  %v252_v7 = vld [vmem:[%s340_s1 + $0x18] sm:$0xff]   ;;  %v254_v9 = vld [vmem:[%s340_s1 + $0x20] sm:$0xff]   ;;  %v256_v13 = vld [vmem:[%s340_s1 + $0x28] sm:$0xff]  }
   0x5   :  { %v15_v11 = vld [vmem:[%s341_s0] sm:$0xff]  ;;  %v257_v14 = vld [vmem:[%s340_s1 + $0x70] sm:$0xff]   ;;  %v259_v16 = vld [vmem:[%s340_s1 + $0x78] sm:$0xff]  }
   0x6   :  { %v206_v12 = vcombine.high %v15_v11, %v15_v11  ;;  %v258_v15 = vld [vmem:[%s340_s1 + $0x30] sm:$0xff]   ;;  %v260_v17 = vld [vmem:[%s340_s1 + $0x38] sm:$0xff]   ;;  %v205_v18 = vcombine.low %v15_v11, %v15_v11  ;;  %v204_v20 = vld [vmem:[%s342_s2] ss:$0 sm:$0xff] }
   0x7   :  { %226 = vmatpush3.bf16.msra.mxu0 %v248_v3 }
   0x8   :  { %227 = vmatprep.subr.bf16.mxu0 %v249_v4  ;;  %190 = vmatprep.mubr.bf16.mxu0 %v206_v12 }
   0xb   :  { %228 = vmatpush3.bf16.msra.mxu0 %v250_v5 }
   0xc   :  { %229 = vmatprep.subr.bf16.mxu0 %v251_v6 }
   0xf   :  { %230 = vmatpush3.bf16.msra.mxu0 %v252_v7 }
  0x10   :  { %231 = vmatprep.subr.bf16.mxu0 %v253_v8 }
  0x13   :  { %232 = vmatpush3.bf16.msra.mxu0 %v254_v9 }
  0x14   :  { %233 = vmatprep.subr.bf16.mxu0 %v255_v10 }
  0x17   :  { %234 = vmatpush3.bf16.msra.mxu0 %v256_v13 }
  0x18   :  { %235 = vmatprep.subr.bf16.mxu0 %v257_v14 }
  0x1b   :  { %236 = vmatpush3.bf16.msra.mxu0 %v258_v15 }
  0x1c   :  { %237 = vmatprep.subr.bf16.mxu0 %v259_v16 }
  0x1f   :  { %238 = vmatpush3.bf16.msra.mxu0 %v260_v17 }
  0x22   :  { %191 = vmatmul.mubr.bf16.vlgmr.msra.gmra.mrb[0].mxu0 %v205_v18 }
  0xf5   :  { %v239_v19 = vpop.f32.mrb[0].mxu0 }
  0xf6   :  { %v240_v21 = vpop.f32.mrb[1].mxu0 }
  0xf7   :  { %v241_v22 = vadd.f32 %v240_v21, %v239_v19  ;;  %v242_v23 = vpop.f32.mrb[2].mxu0 }
  0xf8   :  { %v243_v24 = vpop.f32.mrb[3].mxu0 }
  0xf9   :  { %v193_v25 = vadd.f32 %v241_v22, %v204_v20 }
  0xfb   :  { %v198_v26 = vmax.f32 %v193_v25, 0.0 }
  0xfd   :  { %199 = vst [vmem:[%s343_s3] sm:$0xff] %v198_v26 }

// kernel: spatial_path_forward.7
= control target key start
LH: loop header
LB: loop body
LE: loop exit
PB: predicated region body
PF: predicated region fallthrough
CT: control target
= control target key end

     0   :  { %v217_v1 = vmov 0.0   ;;  %vm218_vm0 = vmmov 0   ;;  %s282_s0 = inlined_call_operand.vmem [shape: bf16[8,128], index: 0, kind: input, shape index: {}]   ;;  %s283_s1 = inlined_call_operand.vmem [shape: bf16[128,128], index: 1, kind: input, shape index: {}]   ;;  %s284_s2 = inlined_call_operand.vmem [shape: f32[1,128], index: 2, kind: input, shape index: {}]   ;;  %s285_s3 = inlined_call_operand.hbm [shape: f32[8,128], index: 3, kind: output, shape index: {}]  }
   0x1   :  { %v185_v0 = vld [vmem:[%s283_s1] sm:$0xff]   ;;  %162 = vmatprep.subr.bf16.mxu0 %v217_v1  ;;  %v186_v2 = vld [vmem:[%s283_s1 + $0x8] sm:$0xff]   ;;  %178 = vmatprep.mubr.msk.bf16.mxu0 %vm218_vm0, %v217_v1  ;;  %v187_v3 = vld [vmem:[%s283_s1 + $0x10] sm:$0xff]  }
   0x2   :  { %163 = vmatpush3.bf16.msra.mxu0 %v185_v0 }
   0x3   :  { %164 = vmatprep.subr.bf16.mxu0 %v217_v1 }
   0x6   :  { %165 = vmatpush3.bf16.msra.mxu0 %v186_v2 }
   0x7   :  { %166 = vmatprep.subr.bf16.mxu0 %v217_v1 }
   0x8   :  { %8 = vsyncpa [#allocation3], 0  ;;  %v188_v4 = vld [vmem:[%s283_s1 + $0x18] sm:$0xff]   ;;  %v189_v5 = vld [vmem:[%s283_s1 + $0x20] sm:$0xff]   ;;  %s219_s5 = smov [#allocation2]  }
   0x9   :  { %v190_v6 = vld [vmem:[%s283_s1 + $0x28] sm:$0xff]   ;;  %v191_v7 = vld [vmem:[%s283_s1 + $0x30] sm:$0xff]   ;;  %v192_v8 = vld [vmem:[%s283_s1 + $0x38] sm:$0xff]   ;;  %s136_s6 = sshll.u32 %s219_s5, 4  ;;  %s137_s6 = int_to_ptr.vmem [resolvable:$true] %s136_s6 }
   0xa   :  { %167 = vmatpush3.bf16.msra.mxu0 %v187_v3  ;;  %v16_v9 = vld [vmem:[%s282_s0] sm:$0xf]  ;;  %s193_s1 = scalar_lea.vmem %s137_s6, 128  ;;  %p198_p1 = scmp.lt.s32.totalorder %s137_s6, %s137_s6 }
   0xb   :  { %168 = vmatprep.subr.bf16.mxu0 %v217_v1  ;;  %v144_v10 = vld [vmem:[%s284_s2] ss:$0 sm:$0xff]  ;;  %p194_p0 = scmp.ne.s32.totalorder %s137_s6, %s193_s1  ;;  %p199_p2 = scmp.lt.s32.totalorder %s193_s1, %s193_s1 }
   0xd   :  { %p200_p3 = por %p199_p2, %p198_p1 }
   0xe   :  { %169 = vmatpush3.bf16.msra.mxu0 %v188_v4 }
   0xf   :  { %170 = vmatprep.subr.bf16.mxu0 %v217_v1  ;;  %p201_p4 = pnand %p200_p3, %p194_p0 }
  0x12   :  { %171 = vmatpush3.bf16.msra.mxu0 %v189_v5 }
  0x13   :  { %172 = vmatprep.subr.bf16.mxu0 %v217_v1 }
  0x16   :  { %173 = vmatpush3.bf16.msra.mxu0 %v190_v6 }
  0x17   :  { %174 = vmatprep.subr.bf16.mxu0 %v217_v1 }
  0x1a   :  { %175 = vmatpush3.bf16.msra.mxu0 %v191_v7 }
  0x1b   :  { %176 = vmatprep.subr.bf16.mxu0 %v217_v1 }
  0x1e   :  { %177 = vmatpush3.bf16.msra.mxu0 %v192_v8 }
  0x21   :  { %179 = vmatmul.mubr.bf16.vlgmr.msra.gmra.mrb[0].mxu0 %v16_v9 }
  0xf4   :  { %v122_v11 = vpop.f32.mrb[0].mxu0 }
  0xf5   :  { %v123_v12 = vadd.f32 %v144_v10, %v122_v11  ;;  %v180_v13 = vpop.f32.mrb[1].mxu0 }
  0xf6   :  { %v125_v14 = vpop.f32.mrb[2].mxu0 }
  0xf7   :  { %v128_v15 = vmax.f32 %v123_v12, 0.0  ;;  %v181_v16 = vpop.f32.mrb[3].mxu0 }
  0xf9   :  { %129 = vst [vmem:[#allocation2] sm:$0xff] %v128_v15 }
  0xfa   :  { %204 = shalt.err (!%p201_p4)
}
  0xfb   :  { %s205_s2 = scalar_lea.hbm %s285_s3, 128 }
  0xfc   :  { %p206_p5 = scmp.ne.s32.totalorder %s285_s3, %s205_s2  ;;  %p209_p6 = scmp.lt.u32.totalorder %s205_s2, %s285_s3 }
  0xfe   :  { %p211_p7 = pnand %p209_p6, %p206_p5 }
 0x100   :  { %214 = shalt.err (!%p211_p7)
}
 0x101   :  { %139 = dma.vmem_to_hbm [thread:$0]  %s137_s6, 128, %s285_s3, [#allocation3]  }
 0x102   :  { %215 = dma.done.wait [#allocation3], 128  }
 0x103   :  { %216 = vsyncadd [#allocation3], 4294967168 }
 0x104   :  { %143 = vsyncpa [#allocation3], 1 }

</bundles_post_ra>
